<compile_context>
chip_gen: v7x
topology: tpu7x:2x2x1
jax: 0.10.0
libtpu: 0.0.40
codegen_flags: <defaults>
</compile_context>

<pallas_src>
import functools

import jax
import jax.numpy as jnp
import numpy as np
from jax import lax
from jax.experimental import pallas as pl
from jax.experimental.pallas import tpu as pltpu

_LANE = 128


def _round_up(x, m):
    return ((x + m - 1) // m) * m


def _diff_loss_kernel(x1_ref, x2_ref, o_ref, *gram_refs, d1, d2, td, inv_d1d2,
                      fuse, mask1, mask2, compute_dtype, precision):
    t = pl.program_id(0)
    n_t = pl.num_programs(0)
    b = x1_ref.shape[0]

    @pl.when(t == 0)
    def _init():
        for g_ref in gram_refs:
            g_ref[...] = jnp.zeros_like(g_ref)

    def _centered(x_ref, d, needs_mask):
        x = x_ref[...].astype(jnp.float32)                       # [B, td]
        if needs_mask:
            # Global column index of every lane in this tile; zero out columns
            # past this input's true feature dim (ragged last tile, or tiles
            # entirely past the smaller input's extent). jnp.where (not a
            # multiply) so garbage in the boundary block cannot inject NaNs.
            col = lax.broadcasted_iota(jnp.int32, x.shape, 1) + t * td
            x = jnp.where(col < d, x, 0.0)
        # Center over the batch dim (exact torch semantics). Masked columns are
        # all-zero -> mean 0 -> stay zero -> contribute nothing to Gram / norms.
        return x - jnp.mean(x, axis=0, keepdims=True)

    x1c = _centered(x1_ref, d1, mask1)
    x2c = _centered(x2_ref, d2, mask2)

    if fuse:
        # Single stacked matmul: stream K through the MXU once for both Grams.
        (g_ref,) = gram_refs
        z = jnp.concatenate([x1c, x2c], axis=0).astype(compute_dtype)  # [2B, td]
        g_ref[...] += lax.dot_general(
            z, z, (((1,), (1,)), ((), ())),
            preferred_element_type=jnp.float32, precision=precision)   # [2B, 2B]
    else:
        g1_ref, g2_ref = gram_refs
        a = x1c.astype(compute_dtype)
        c = x2c.astype(compute_dtype)
        g1_ref[...] += lax.dot_general(
            a, a, (((1,), (1,)), ((), ())),
            preferred_element_type=jnp.float32, precision=precision)   # [B, B]
        g2_ref[...] += lax.dot_general(
            c, c, (((1,), (1,)), ((), ())),
            preferred_element_type=jnp.float32, precision=precision)   # [B, B]

    @pl.when(t == n_t - 1)
    def _finalize():
        if fuse:
            (g_ref,) = gram_refs
            g1 = g_ref[pl.ds(0, b), pl.ds(0, b)]
            g2 = g_ref[pl.ds(b, b), pl.ds(b, b)]
        else:
            g1_ref, g2_ref = gram_refs
            g1 = g1_ref[...]
            g2 = g2_ref[...]

        eye = (lax.broadcasted_iota(jnp.int32, (b, b), 0) ==
               lax.broadcasted_iota(jnp.int32, (b, b), 1))

        def _normalized(g):
            # diag(Gram) = squared L2 norm of each centered row; fold the
            # 1/(norm + 1e-6) row/col scaling into the Gram before the product
            # (keeps intermediates in a safe f32 range for large D).
            gd = jnp.where(eye, g, 0.0)
            wc = 1.0 / (jnp.sqrt(jnp.sum(gd, axis=1, keepdims=True)) + 1e-6)  # [B,1]
            wr = 1.0 / (jnp.sqrt(jnp.sum(gd, axis=0, keepdims=True)) + 1e-6)  # [1,B]
            return g * wc * wr

        loss = jnp.sum(_normalized(g1) * _normalized(g2)) * inv_d1d2
        o_ref[...] = jnp.full((1, _LANE), loss, dtype=jnp.float32)


def diff_loss(input1, input2, *, tile_d=None):
    """Forward pass of DiffLoss. input1: [B, ...], input2: [B, ...]."""
    if input1.shape[0] != input2.shape[0]:
        raise ValueError("input1 and input2 must share the batch dimension")
    b = input1.shape[0]
    x1 = input1.reshape(b, -1)
    x2 = input2.reshape(b, -1)
    d1, d2 = x1.shape[1], x2.shape[1]

    # Fused stacked Gram only when the concat/slice offsets are sublane aligned
    # and 2B fits a single MXU tile on every generation.
    fuse = (b % 8 == 0) and (2 * b <= 128)
    # Large B flips the kernel compute-bound: bf16 MXU operands, f32 accumulate.
    compute_dtype = jnp.bfloat16 if b >= 256 else jnp.float32
    precision = None if compute_dtype == jnp.bfloat16 else lax.Precision.HIGHEST

    i1 = jnp.dtype(x1.dtype).itemsize
    i2 = jnp.dtype(x2.dtype).itemsize
    gram_bytes = (4 * b * b * 4) if fuse else (2 * b * b * 4)

    # Tile width: lane aligned, ~4-6 MiB per input tile (amortizes per-step
    # overhead, pushes DMA toward the HBM roofline) inside a conservative
    # cross-generation VMEM budget (v7x has only 64 MiB physical per TC).
    if tile_d is None:
        budget = (40 << 20) - gram_bytes
        per_tile = min(6 << 20, max(1 << 20, budget // 4))
        tile_d = max(_LANE, per_tile // (max(i1, i2) * b))
    td = _round_up(int(tile_d), _LANE)
    td = min(td, _round_up(max(d1, d2), _LANE))

    nt1 = pl.cdiv(d1, td)
    nt2 = pl.cdiv(d2, td)
    n_steps = max(nt1, nt2)

    # Static: which inputs need in-kernel column masking (ragged last tile, or
    # fewer tiles than the shared grid).
    mask1 = (d1 % td != 0) or (nt1 < n_steps)
    mask2 = (d2 % td != 0) or (nt2 < n_steps)

    def _col_spec(num_blocks):
        if num_blocks == n_steps:
            return pl.BlockSpec((b, td), lambda t: (0, t))
        last = num_blocks - 1
        # Clamp: once this input's tiles are exhausted the block index stops
        # changing (repeated-block DMA is elided) and the tile masks to zero.
        return pl.BlockSpec((b, td), lambda t: (0, jnp.minimum(t, last)))

    if fuse:
        scratch_shapes = [pltpu.VMEM((2 * b, 2 * b), jnp.float32)]
    else:
        scratch_shapes = [pltpu.VMEM((b, b), jnp.float32),
                          pltpu.VMEM((b, b), jnp.float32)]

    # Explicit VMEM budget: 2 pipeline buffers per input + Gram scratch + margin.
    vmem_limit = 2 * b * td * (i1 + i2) + gram_bytes + (2 << 20)
    vmem_limit = int(min(max(vmem_limit, 4 << 20), 64 << 20))

    kernel = functools.partial(
        _diff_loss_kernel, d1=d1, d2=d2, td=td, inv_d1d2=1.0 / float(d1 * d2),
        fuse=fuse, mask1=mask1, mask2=mask2, compute_dtype=compute_dtype,
        precision=precision)

    out = pl.pallas_call(
        kernel,
        out_shape=jax.ShapeDtypeStruct((1, _LANE), jnp.float32),
        grid_spec=pltpu.PrefetchScalarGridSpec(
            num_scalar_prefetch=0,
            grid=(n_steps,),
            in_specs=[_col_spec(nt1), _col_spec(nt2)],
            out_specs=pl.BlockSpec((1, _LANE), lambda t: (0, 0)),
            scratch_shapes=scratch_shapes,
        ),
        compiler_params=pltpu.CompilerParams(
            dimension_semantics=("arbitrary",),   # running Gram accumulation
            vmem_limit_bytes=vmem_limit,
        ),
    )(x1, x2)
    return out[0, 0]


def _diff_loss_ref(input1, input2):
    """float64 numpy reference mirroring the PyTorch module exactly."""
    b = input1.shape[0]
    x1 = np.asarray(input1, dtype=np.float64).reshape(b, -1)
    x2 = np.asarray(input2, dtype=np.float64).reshape(b, -1)
    x1 = x1 - x1.mean(axis=0, keepdims=True)
    x2 = x2 - x2.mean(axis=0, keepdims=True)
    x1 = x1 / (np.linalg.norm(x1, axis=1, keepdims=True) + 1e-6)
    x2 = x2 / (np.linalg.norm(x2, axis=1, keepdims=True) + 1e-6)
    m = x1.T @ x2
    return np.mean(m ** 2)


if __name__ == "__main__":
    key = jax.random.PRNGKey(0)
    k1, k2, k3, k4 = jax.random.split(key, 4)

    # Case 1: conv-style feature maps, B=4 (unfused path since B % 8 != 0),
    # D = 4*16*16 = 1024; tile_d=512 forces a 2-step reduction grid.
    a1 = jax.random.normal(k1, (4, 4, 16, 16), dtype=jnp.float32)
    b1 = jax.random.normal(k2, (4, 4, 16, 16), dtype=jnp.float32)
    loss1 = jax.block_until_ready(diff_loss(a1, b1, tile_d=512))
    ref1 = _diff_loss_ref(np.asarray(a1), np.asarray(b1))
    np.testing.assert_allclose(np.asarray(loss1), ref1, rtol=3e-5, atol=1e-9)

    # Case 2: B=8 (fused stacked-Gram path), mismatched non-128-aligned feature
    # dims (D1=512, D2=300); tile_d=128 -> 4 vs 3 tiles, exercising the ragged
    # last-tile masking and the decoupled (clamped) index map for input2.
    a2 = jax.random.normal(k3, (8, 8, 8, 8), dtype=jnp.float32)
    b2 = jax.random.normal(k4, (8, 300), dtype=jnp.float32)
    loss2 = jax.block_until_ready(diff_loss(a2, b2, tile_d=128))
    ref2 = _diff_loss_ref(np.asarray(a2), np.asarray(b2))
    np.testing.assert_allclose(np.asarray(loss2), ref2, rtol=3e-5, atol=1e-9)

    # Case 3: same inputs, default tile heuristic (single-tile fast path).
    loss3 = jax.block_until_ready(diff_loss(a2, b2))
    np.testing.assert_allclose(np.asarray(loss3), ref2, rtol=3e-5, atol=1e-9)

    print("KERNEL_OK")
</pallas_src>

<mosaic_0001>
module attributes {stable_mosaic.version = 11 : i64} {
  func.func @_diff_loss_kernel(%arg0: i32, %arg1: memref<4x512xf32, #tpu.memory_space<vmem>>, %arg2: memref<4x512xf32, #tpu.memory_space<vmem>>, %arg3: memref<1x128xf32, #tpu.memory_space<vmem>>, %arg4: memref<4x4xf32, #tpu.memory_space<vmem>>, %arg5: memref<4x4xf32, #tpu.memory_space<vmem>>) attributes {dimension_semantics = [#tpu.dimension_semantics<arbitrary>], iteration_bounds = array<i64: 2>, scalar_prefetch = 0 : i64, scratch_operands = 2 : i64, tpu.core_type = #tpu.core_type<tc>, window_params = [{transform_indices = @transform_0, window_bounds = array<i64: 4, 512>}, {transform_indices = @transform_1, window_bounds = array<i64: 4, 512>}, {pipeline_mode = #tpu.pipeline_mode<synchronous>, transform_indices = @transform_2, window_bounds = array<i64: 1, 128>}]} {
    %c0_i32 = arith.constant 0 : i32
    %0 = arith.cmpi eq, %arg0, %c0_i32 : i32
    %1 = arith.extui %0 : i1 to i32
    %c0_i32_0 = arith.constant 0 : i32
    %2 = arith.cmpi ne, %1, %c0_i32_0 : i32
    scf.if %2 {
      %cst_18 = arith.constant 0.000000e+00 : f32
      %28 = vector.broadcast %cst_18 : f32 to vector<4x4xf32>
      %c0_19 = arith.constant 0 : index
      %c0_20 = arith.constant 0 : index
      %29 = vector.load %arg4[%c0_19, %c0_20] : memref<4x4xf32, #tpu.memory_space<vmem>>, vector<4x4xf32>
      tpu.vector_store %arg4[%c0_19, %c0_20], %28 {strides = array<i32>} : memref<4x4xf32, #tpu.memory_space<vmem>>, vector<4x4xf32>,
      %cst_21 = arith.constant 0.000000e+00 : f32
      %30 = vector.broadcast %cst_21 : f32 to vector<4x4xf32>
      %c0_22 = arith.constant 0 : index
      %c0_23 = arith.constant 0 : index
      %31 = vector.load %arg5[%c0_22, %c0_23] : memref<4x4xf32, #tpu.memory_space<vmem>>, vector<4x4xf32>
      tpu.vector_store %arg5[%c0_22, %c0_23], %30 {strides = array<i32>} : memref<4x4xf32, #tpu.memory_space<vmem>>, vector<4x4xf32>,
    } else {
    }
    %c0 = arith.constant 0 : index
    %c0_1 = arith.constant 0 : index
    %3 = vector.load %arg1[%c0, %c0_1] : memref<4x512xf32, #tpu.memory_space<vmem>>, vector<4x512xf32>
    %cst = arith.constant dense<0.000000e+00> : vector<512xf32>
    %4 = vector.multi_reduction <add>, %3, %cst [0] : vector<4x512xf32> to vector<512xf32>
    %5 = vector.shape_cast %4 : vector<512xf32> to vector<1x512xf32>
    %cst_2 = arith.constant 4.000000e+00 : f32
    %6 = vector.broadcast %cst_2 : f32 to vector<1x512xf32>
    %7 = arith.divf %5, %6 : vector<1x512xf32>
    %8 = vector.broadcast %7 : vector<1x512xf32> to vector<4x512xf32>
    %9 = arith.subf %3, %8 : vector<4x512xf32>
    %c0_3 = arith.constant 0 : index
    %c0_4 = arith.constant 0 : index
    %10 = vector.load %arg2[%c0_3, %c0_4] : memref<4x512xf32, #tpu.memory_space<vmem>>, vector<4x512xf32>
    %cst_5 = arith.constant dense<0.000000e+00> : vector<512xf32>
    %11 = vector.multi_reduction <add>, %10, %cst_5 [0] : vector<4x512xf32> to vector<512xf32>
    %12 = vector.shape_cast %11 : vector<512xf32> to vector<1x512xf32>
    %cst_6 = arith.constant 4.000000e+00 : f32
    %13 = vector.broadcast %cst_6 : f32 to vector<1x512xf32>
    %14 = arith.divf %12, %13 : vector<1x512xf32>
    %15 = vector.broadcast %14 : vector<1x512xf32> to vector<4x512xf32>
    %16 = arith.subf %10, %15 : vector<4x512xf32>
    %c0_7 = arith.constant 0 : index
    %c0_8 = arith.constant 0 : index
    %17 = vector.load %arg4[%c0_7, %c0_8] : memref<4x4xf32, #tpu.memory_space<vmem>>, vector<4x4xf32>
    %cst_9 = arith.constant dense<0.000000e+00> : vector<4x4xf32>
    %18 = tpu.matmul %9, %9, %cst_9 {dimension_numbers = #tpu.dot_dimension_numbers<[1], [1], [0], [0], [0, 0, 1, 0], [], []>, precision = #tpu.contract_precision<fp32>} : vector<4x512xf32>, vector<4x512xf32>, vector<4x4xf32> -> vector<4x4xf32>
    %19 = arith.addf %17, %18 : vector<4x4xf32>
    %c0_10 = arith.constant 0 : index
    %c0_11 = arith.constant 0 : index
    %20 = vector.load %arg4[%c0_10, %c0_11] : memref<4x4xf32, #tpu.memory_space<vmem>>, vector<4x4xf32>
    tpu.vector_store %arg4[%c0_10, %c0_11], %19 {strides = array<i32>} : memref<4x4xf32, #tpu.memory_space<vmem>>, vector<4x4xf32>,
    %c0_12 = arith.constant 0 : index
    %c0_13 = arith.constant 0 : index
    %21 = vector.load %arg5[%c0_12, %c0_13] : memref<4x4xf32, #tpu.memory_space<vmem>>, vector<4x4xf32>
    %cst_14 = arith.constant dense<0.000000e+00> : vector<4x4xf32>
    %22 = tpu.matmul %16, %16, %cst_14 {dimension_numbers = #tpu.dot_dimension_numbers<[1], [1], [0], [0], [0, 0, 1, 0], [], []>, precision = #tpu.contract_precision<fp32>} : vector<4x512xf32>, vector<4x512xf32>, vector<4x4xf32> -> vector<4x4xf32>
    %23 = arith.addf %21, %22 : vector<4x4xf32>
    %c0_15 = arith.constant 0 : index
    %c0_16 = arith.constant 0 : index
    %24 = vector.load %arg5[%c0_15, %c0_16] : memref<4x4xf32, #tpu.memory_space<vmem>>, vector<4x4xf32>
    tpu.vector_store %arg5[%c0_15, %c0_16], %23 {strides = array<i32>} : memref<4x4xf32, #tpu.memory_space<vmem>>, vector<4x4xf32>,
    %c1_i32 = arith.constant 1 : i32
    %25 = arith.cmpi eq, %arg0, %c1_i32 : i32
    %26 = arith.extui %25 : i1 to i32
    %c0_i32_17 = arith.constant 0 : i32
    %27 = arith.cmpi ne, %26, %c0_i32_17 : i32
    scf.if %27 {
      %c0_18 = arith.constant 0 : index
      %c0_19 = arith.constant 0 : index
      %28 = vector.load %arg4[%c0_18, %c0_19] : memref<4x4xf32, #tpu.memory_space<vmem>>, vector<4x4xf32>
      %c0_20 = arith.constant 0 : index
      %c0_21 = arith.constant 0 : index
      %29 = vector.load %arg5[%c0_20, %c0_21] : memref<4x4xf32, #tpu.memory_space<vmem>>, vector<4x4xf32>
      %30 = tpu.iota {dimensions = array<i32: 0>} : vector<4x4xi32>
      %31 = tpu.iota {dimensions = array<i32: 1>} : vector<4x4xi32>
      %32 = arith.cmpi eq, %30, %31 : vector<4x4xi32>
      %cst_22 = arith.constant 0.000000e+00 : f32
      %33 = vector.broadcast %cst_22 : f32 to vector<4x4xf32>
      %34 = arith.select %32, %28, %33 : vector<4x4xi1>, vector<4x4xf32>
      %cst_23 = arith.constant dense<0.000000e+00> : vector<4xf32>
      %35 = vector.multi_reduction <add>, %34, %cst_23 [1] : vector<4x4xf32> to vector<4xf32>
      %36 = vector.shape_cast %35 : vector<4xf32> to vector<4x1xf32>
      %37 = math.sqrt %36 : vector<4x1xf32>
      %cst_24 = arith.constant 9.99999997E-7 : f32
      %38 = vector.broadcast %cst_24 : f32 to vector<4x1xf32>
      %39 = arith.addf %37, %38 : vector<4x1xf32>
      %cst_25 = arith.constant 1.000000e+00 : f32
      %40 = vector.broadcast %cst_25 : f32 to vector<4x1xf32>
      %41 = arith.divf %40, %39 : vector<4x1xf32>
      %cst_26 = arith.constant dense<0.000000e+00> : vector<4xf32>
      %42 = vector.multi_reduction <add>, %34, %cst_26 [0] : vector<4x4xf32> to vector<4xf32>
      %43 = vector.shape_cast %42 : vector<4xf32> to vector<1x4xf32>
      %44 = math.sqrt %43 : vector<1x4xf32>
      %cst_27 = arith.constant 9.99999997E-7 : f32
      %45 = vector.broadcast %cst_27 : f32 to vector<1x4xf32>
      %46 = arith.addf %44, %45 : vector<1x4xf32>
      %cst_28 = arith.constant 1.000000e+00 : f32
      %47 = vector.broadcast %cst_28 : f32 to vector<1x4xf32>
      %48 = arith.divf %47, %46 : vector<1x4xf32>
      %49 = vector.broadcast %41 : vector<4x1xf32> to vector<4x4xf32>
      %50 = arith.mulf %28, %49 : vector<4x4xf32>
      %51 = vector.broadcast %48 : vector<1x4xf32> to vector<4x4xf32>
      %52 = arith.mulf %50, %51 : vector<4x4xf32>
      %cst_29 = arith.constant 0.000000e+00 : f32
      %53 = vector.broadcast %cst_29 : f32 to vector<4x4xf32>
      %54 = arith.select %32, %29, %53 : vector<4x4xi1>, vector<4x4xf32>
      %cst_30 = arith.constant dense<0.000000e+00> : vector<4xf32>
      %55 = vector.multi_reduction <add>, %54, %cst_30 [1] : vector<4x4xf32> to vector<4xf32>
      %56 = vector.shape_cast %55 : vector<4xf32> to vector<4x1xf32>
      %57 = math.sqrt %56 : vector<4x1xf32>
      %cst_31 = arith.constant 9.99999997E-7 : f32
      %58 = vector.broadcast %cst_31 : f32 to vector<4x1xf32>
      %59 = arith.addf %57, %58 : vector<4x1xf32>
      %cst_32 = arith.constant 1.000000e+00 : f32
      %60 = vector.broadcast %cst_32 : f32 to vector<4x1xf32>
      %61 = arith.divf %60, %59 : vector<4x1xf32>
      %cst_33 = arith.constant dense<0.000000e+00> : vector<4xf32>
      %62 = vector.multi_reduction <add>, %54, %cst_33 [0] : vector<4x4xf32> to vector<4xf32>
      %63 = vector.shape_cast %62 : vector<4xf32> to vector<1x4xf32>
      %64 = math.sqrt %63 : vector<1x4xf32>
      %cst_34 = arith.constant 9.99999997E-7 : f32
      %65 = vector.broadcast %cst_34 : f32 to vector<1x4xf32>
      %66 = arith.addf %64, %65 : vector<1x4xf32>
      %cst_35 = arith.constant 1.000000e+00 : f32
      %67 = vector.broadcast %cst_35 : f32 to vector<1x4xf32>
      %68 = arith.divf %67, %66 : vector<1x4xf32>
      %69 = vector.broadcast %61 : vector<4x1xf32> to vector<4x4xf32>
      %70 = arith.mulf %29, %69 : vector<4x4xf32>
      %71 = vector.broadcast %68 : vector<1x4xf32> to vector<4x4xf32>
      %72 = arith.mulf %70, %71 : vector<4x4xf32>
      %73 = arith.mulf %52, %72 : vector<4x4xf32>
      %74 = vector.shape_cast %73 : vector<4x4xf32> to vector<1x4x4xf32>
      %cst_36 = arith.constant dense<0.000000e+00> : vector<1xf32>
      %75 = vector.multi_reduction <add>, %74, %cst_36 [1, 2] : vector<1x4x4xf32> to vector<1xf32>
      %76 = vector.shape_cast %75 : vector<1xf32> to vector<1x1x1xf32>
      %77 = vector.extract %76[0, 0, 0] : f32 from vector<1x1x1xf32>
      %cst_37 = arith.constant 9.53674316E-7 : f32
      %78 = arith.mulf %77, %cst_37 : f32
      %79 = vector.broadcast %78 : f32 to vector<1x128xf32>
      %c0_38 = arith.constant 0 : index
      %c0_39 = arith.constant 0 : index
      %80 = vector.load %arg3[%c0_38, %c0_39] : memref<1x128xf32, #tpu.memory_space<vmem>>, vector<1x128xf32>
      tpu.vector_store %arg3[%c0_38, %c0_39], %79 {strides = array<i32>} : memref<1x128xf32, #tpu.memory_space<vmem>>, vector<1x128xf32>,
    } else {
    }
    return
  }
  func.func @transform_0(%arg0: i32) -> (i32, i32) {
    %c0_i32 = arith.constant 0 : i32
    %c0_i32_0 = arith.constant 0 : i32
    return %c0_i32, %arg0 : i32, i32
  }
  func.func @transform_1(%arg0: i32) -> (i32, i32) {
    %c0_i32 = arith.constant 0 : i32
    %c0_i32_0 = arith.constant 0 : i32
    return %c0_i32, %arg0 : i32, i32
  }
  func.func @transform_2(%arg0: i32) -> (i32, i32) {
    %c0_i32 = arith.constant 0 : i32
    %c0_i32_0 = arith.constant 0 : i32
    %c0_i32_1 = arith.constant 0 : i32
    return %c0_i32, %c0_i32_0 : i32, i32
  }
}

</mosaic_0001>

<bundles_post_ra>
// kernel: tpu_custom_call.1
= control target key start
LH: loop header
LB: loop body
LE: loop exit
PB: predicated region body
PF: predicated region fallthrough
CT: control target
= control target key end

     0   :  { %7 = vsyncpa [#allocation5], 0  ;;  %s2898_s0 = inlined_call_operand.hbm [shape: f32[4,1024], index: 0, kind: input, shape index: {}]   ;;  %s2899_s1 = inlined_call_operand.hbm [shape: f32[4,1024], index: 1, kind: input, shape index: {}]   ;;  %s2900_s2 = inlined_call_operand.hbm [shape: f32[1,128], index: 2, kind: output, shape index: {}]  }
   0x1   :  { %9 = vsyncpa [#allocation5 + $0x1], 0 }
   0x2   :  { %10 = vsyncpa [#allocation8], 0 }
   0x3   :  { %12 = vsyncpa [#allocation8 + $0x1], 0 }
   0x4   :  { %13 = vsyncpa [#allocation6], 0  ;;  %s2616_s9 = smov 0   ;;  %s2618_s10 = smov 0  }
   0x5   :  { %s2620_s11 = smov 0   ;;  %s2622_s12 = smov 0  }
   0x6 LB: > { %s2635_s13 = sadd.s32 4294967295, %s2595_s12   ;;  %s2638_s14 = sadd.s32 1, %s2595_s12   ;;  %s2595_s12 = sphi %s2622_s12, %s2912_s12   ;;  %s2591_s11 = sphi %s2620_s11, %s2911_s11   ;;  %s2587_s10 = sphi %s2618_s10, %s2910_s10   ;;  %s2583_s9 = sphi %s2616_s9, %s2909_s9  }
   0x7   : > { %s23_s15 = ssub.s32 %s2595_s12, %s2638_s14  ;;  %s26_s16 = sadd.s32 1, %s2591_s11 }
   0x8   : > { %p24_p0 = scmp.eq.s32.totalorder %s23_s15, 0  ;;  %p33_p1 = scmp.ne.s32.totalorder %s2591_s11, %s2587_s10 }
   0x9   : > { %p34_p2 = scmp.eq.s32.totalorder %s2595_s12, 0  ;;  %p39_p3 = scmp.ne.s32.totalorder %s2587_s10, %s2583_s9 }
   0xa   : > { %s2648_s17 = scalar_select %p24_p0, %s2591_s11, %s26_s16  }
   0xb   : > { %p35_p4 = por %p34_p2, %p33_p1  ;;  %p40_p5 = scmp.eq.s32.totalorder %s2635_s13, 0 }
   0xc   : > { %p2410_p6 = scmp.lt.s32.totalorder %s2595_s12, 2  ;;  %s2657_s19 = sand.u32 1, %s2591_s11  }
   0xd   : > { %p2652_p7 = por %p40_p5, %p39_p3  ;;  %s2376_s20 = sshll.u32 %s2657_s19, 4 }
   0xe   : > { %s2391_s21 = sshll.u32 %s2595_s12, 8  ;;  %s114_s25 = scalar_lea.vmem [#allocation4], %s2376_s20 }
   0xf   : > { %s2902_s18 = scalar_select %p2652_p7, 1, 0 }
  0x10   : > { %s2666_s24 = scalar_lea.hbm %s2898_s0, %s2391_s21  ;;  %s122_s26 = sshll.u32 %s114_s25, 4  ;;  %s2670_s26 = int_to_ptr.vmem [resolvable:$true] %s122_s26 }
  0x11   : > { %p2672_p8 = pnand %p2410_p6, %p35_p4  ;;  %s111_s28 = scalar_lea.sflag [#allocation5], %s2657_s19 }
  0x12   : > { %s2467_s29 = scalar_lea.hbm %s2666_s24, 256  ;;  %s2472_s4 = scalar_lea.hbm %s2898_s0, 512 }
  0x13   : > { %p2468_p11 = scmp.ne.s32.totalorder %s2666_s24, %s2467_s29  ;;  %p2469_p12 = pneg %p2672_p8 }
  0x14   : > { %p2473_p1 = scmp.lt.u32.totalorder %s2666_s24, %s2898_s0  ;;  %p2474_p2 = scmp.lt.u32.totalorder %s2472_s4, %s2467_s29 }
  0x15   : > { %p2470_p13 = pnand %p2469_p12, %p2468_p11  ;;  %p2476_p4 = scmp.lt.u32.totalorder %s2467_s29, %s2666_s24 }
  0x16   : > { %p2475_p3 = por %p2474_p2, %p2473_p1 }
  0x17   : > { %p2471_p0 = pneg %p2470_p13 }
  0x18   : > { %p2477_p5 = por %p2476_p4, %p2475_p3 }
  0x1a   : > { %p2478_p6 = pnand %p2477_p5, %p2471_p0 }
  0x1c   : > { %2481 = shalt.err (!%p2478_p6)
}
  0x1d   : > { %s2482_s7 = scalar_lea.vmem %s2670_s26, 256  ;;  %s2597_s8 = smov [#allocation4]  }
  0x1e   : > { %p2483_p11 = scmp.ne.s32.totalorder %s2670_s26, %s2482_s7  ;;  %s2487_s9 = sshll.u32 %s2597_s8, 4  ;;  %s2488_s9 = int_to_ptr.vmem [resolvable:$false] %s2487_s9 }
  0x1f   : > { %s2489_s15 = scalar_lea.vmem %s2488_s9, 512  ;;  %p2490_p10 = scmp.lt.s32.totalorder %s2670_s26, %s2488_s9 }
  0x20   : > { %p2485_p13 = pnand %p2483_p11, %p2469_p12  ;;  %p2491_p1 = scmp.lt.s32.totalorder %s2489_s15, %s2482_s7 }
  0x22   : > { %p2486_p9 = pneg %p2485_p13  ;;  %p2492_p2 = por %p2491_p1, %p2490_p10 }
  0x24   : > { %p2493_p3 = pnand %p2492_p2, %p2486_p9 }
  0x26   : > { %2496 = shalt.err (!%p2493_p3)
}
  0x27   : > { %2406 = dma.hbm_to_vmem [thread:$0]  (!%p2672_p8), %s2666_s24, 256, %s2670_s26, %s111_s28  }
  0x28   : > { %p2904_p0 = scmp.lt.s32.totalorder %s2595_s12, 3  ;;  %p2905_p4 = scmp.ge.s32.totalorder %s2595_s12, 1 }
  0x29   : > { %s2717_s25 = scalar_lea.hbm %s2899_s1, %s2391_s21  ;;  %s133_s29 = scalar_lea.vmem [#allocation7], %s2376_s20 }
  0x2a   : > { %p2708_p5 = pnand %p2905_p4, %p2904_p0  ;;  %s141_s30 = sshll.u32 %s133_s29, 4  ;;  %s142_s30 = int_to_ptr.vmem [resolvable:$true] %s141_s30 }
  0x2b   : > { %s130_s24 = scalar_lea.sflag [#allocation8], %s2657_s19  ;;  %s2497_s26 = scalar_lea.hbm %s2717_s25, 256 }
  0x2c   : > { %s2906_s16 = scalar_select %p2708_p5, 1, 0 }
  0x2d   : > { %p2498_p9 = scmp.ne.s32.totalorder %s2717_s25, %s2497_s26  ;;  %s2502_s21 = scalar_lea.hbm %s2899_s1, 512 }
  0x2e   : > { %p2503_p11 = scmp.lt.u32.totalorder %s2717_s25, %s2899_s1  ;;  %p2504_p13 = scmp.lt.u32.totalorder %s2502_s21, %s2497_s26 }
  0x2f   : > { %p2500_p10 = pnand %p2498_p9, %p2469_p12  ;;  %p2506_p2 = scmp.lt.u32.totalorder %s2497_s26, %s2717_s25 }
  0x30   : > { %p2505_p1 = por %p2504_p13, %p2503_p11 }
  0x31   : > { %p2501_p6 = pneg %p2500_p10 }
  0x32   : > { %p2507_p3 = por %p2506_p2, %p2505_p1 }
  0x34   : > { %p2508_p0 = pnand %p2507_p3, %p2501_p6 }
  0x36   : > { %2511 = shalt.err (!%p2508_p0)
}
  0x37   : > { %s2512_s19 = scalar_lea.vmem %s142_s30, 256  ;;  %s2598_s20 = smov [#allocation7]  }
  0x38   : > { %p2513_p4 = scmp.ne.s32.totalorder %s142_s30, %s2512_s19  ;;  %s2517_s5 = sshll.u32 %s2598_s20, 4  ;;  %s2518_s5 = int_to_ptr.vmem [resolvable:$false] %s2517_s5 }
  0x39   : > { %s2519_s6 = scalar_lea.vmem %s2518_s5, 512  ;;  %p2520_p7 = scmp.lt.s32.totalorder %s142_s30, %s2518_s5 }
  0x3a   : > { %p2515_p9 = pnand %p2513_p4, %p2469_p12  ;;  %p2521_p5 = scmp.lt.s32.totalorder %s2519_s6, %s2512_s19 }
  0x3c   : > { %p2516_p10 = pneg %p2515_p9  ;;  %p2522_p11 = por %p2521_p5, %p2520_p7 }
  0x3e   : > { %p2523_p13 = pnand %p2522_p11, %p2516_p10 }
  0x40   : > { %2526 = shalt.err (!%p2523_p13)
}
  0x41   : > { %2409 = dma.hbm_to_vmem [thread:$0]  (!%p2672_p8), %s2717_s25, 256, %s142_s30, %s130_s24  }
  0x42   : > { %p2907_p6 = scmp.ne.s32.totalorder %s2906_s16, 0 }
  0x43   : > { %s152_s7 = sand.u32 (!%p2907_p6), 1, %s2587_s10   ;;  %p2908_p12 = scmp.ne.s32.totalorder (!%p2907_p6), %s2902_s18, 0 }
  0x44   : > { %150 = sbr.rel (%p2907_p6) target bundleno = 805 (0x325), region = 28  ;;  %s2383_s8 = sshll.u32 (!%p2907_p6), %s152_s7, 4 }
  0x45   : > { %s153_s9 = scalar_lea.sflag (!%p2907_p6), [#allocation5], %s152_s7  ;;  %s156_s15 = scalar_lea.vmem (!%p2907_p6), [#allocation4], %s2383_s8 }
  0x4b   : > { %2570 = dma.done.wait (%p2908_p12), %s153_s9, 256  }
  0x4c   : > { %2572 = vsyncadd (%p2908_p12), %s153_s9, 4294967040  ;;  %s162_s22 = scalar_lea.sflag [#allocation8], %s152_s7  ;;  %s165_s23 = scalar_lea.vmem [#allocation7], %s2383_s8 }
  0x4d   : > { %2574 = dma.done.wait (%p2908_p12), %s162_s22, 256  }
  0x4e   : > { %2576 = vsyncadd (%p2908_p12), %s162_s22, 4294967040  ;;  %p2385_p7 = scmp.ne.s32.totalorder %s2635_s13, 0 }
  0x4f   : > { %vm192_vm0 = vcmask (!%p2385_p7), 27648   ;;  %v2599_v0 = vmov (!%p2385_p7), 0.0  }
  0x50   : > { %191 = sbr.rel (%p2385_p7) target bundleno = 87 (0x57), region = 40  ;;  %193 = vst.msk [vmem:[#allocation2] sm:$0xf] (!%p2385_p7), %vm192_vm0, %v2599_v0  ;;  %194 = vst.msk [vmem:[#allocation3] sm:$0xf] (!%p2385_p7), %vm192_vm0, %v2599_v0 }
  0x57 PF: > { %v2753_v1 = vld [vmem:[%s156_s15] sm:$0xff]  ;;  %vm203_vm1 = vcmask 1043456   ;;  %v2755_v2 = vld [vmem:[%s156_s15 + $0x8] sm:$0xff]  ;;  %vm1249_vm2 = vcmask 27648   ;;  %p2386_p8 = scmp.ne.s32.totalorder %s2635_s13, 1 }
  0x58   : > { %v2757_v3 = vld [vmem:[%s165_s23] sm:$0xff]  ;;  %v199_v4 = vcombine.high %v2753_v1, %v2753_v1  ;;  %v204_v5 = vsel %vm203_vm1, %v2753_v1, 0.0  ;;  %v200_v6 = vcombine.high %v2755_v2, %v2755_v2  ;;  %v218_v7 = vsel %vm203_vm1, %v2755_v2, 0.0  ;;  %v2767_v8 = vld [vmem:[%s165_s23 + $0x8] sm:$0xff] }
  0x59   : > { %v205_v9 = vrot.slane %v204_v5, 4  ;;  %v219_v10 = vrot.slane %v218_v7, 4  ;;  %v251_v11 = vcombine.high %v2757_v3, %v2757_v3  ;;  %v255_v12 = vsel %vm203_vm1, %v2757_v3, 0.0 }
  0x5a   : > { %v211_v13 = vsel %vm203_vm1, %v199_v4, 0.0  ;;  %v225_v14 = vsel %vm203_vm1, %v200_v6, 0.0  ;;  %v256_v15 = vrot.slane %v255_v12, 4  ;;  %v252_v16 = vcombine.high %v2767_v8, %v2767_v8 }
  0x5b   : > { %v206_v17 = vadd.f32 %v205_v9, %v204_v5  ;;  %v212_v18 = vrot.slane %v211_v13, 4  ;;  %v220_v19 = vadd.f32 %v219_v10, %v218_v7  ;;  %v226_v20 = vrot.slane %v225_v14, 4 }
  0x5c   : > { %v257_v21 = vadd.f32 %v256_v15, %v255_v12  ;;  %v262_v22 = vsel %vm203_vm1, %v251_v11, 0.0  ;;  %v269_v23 = vsel %vm203_vm1, %v2767_v8, 0.0  ;;  %v276_v24 = vsel %vm203_vm1, %v252_v16, 0.0 }
  0x5d   : > { %v207_v25 = vrot.slane %v206_v17, 2  ;;  %v213_v26 = vadd.f32 %v212_v18, %v211_v13  ;;  %v221_v27 = vrot.slane %v220_v19, 2  ;;  %v227_v28 = vadd.f32 %v226_v20, %v225_v14 }
  0x5e   : > { %v258_v29 = vrot.slane %v257_v21, 2  ;;  %v263_v30 = vrot.slane %v262_v22, 4  ;;  %v270_v37 = vrot.slane %v269_v23, 4  ;;  %v277_v38 = vrot.slane %v276_v24, 4 }
  0x5f   : > { %v208_v31 = vadd.f32 %v207_v25, %v206_v17  ;;  %v214_v32 = vrot.slane %v213_v26, 2  ;;  %v222_v33 = vadd.f32 %v221_v27, %v220_v19  ;;  %v228_v34 = vrot.slane %v227_v28, 2 }
  0x60   : > { %v259_v35 = vadd.f32 %v258_v29, %v257_v21  ;;  %v264_v36 = vadd.f32 %v263_v30, %v262_v22  ;;  %v271_v50 = vadd.f32 %v270_v37, %v269_v23  ;;  %v278_v51 = vadd.f32 %v277_v38, %v276_v24 }
  0x61   : > { %v209_v39 = vrot.slane %v208_v31, 1  ;;  %v215_v40 = vadd.f32 %v214_v32, %v213_v26  ;;  %v223_v41 = vrot.slane %v222_v33, 1  ;;  %v229_v42 = vadd.f32 %v228_v34, %v227_v28 }
  0x62   : > { %v265_v43 = vrot.slane %v264_v36, 2  ;;  %v260_v48 = vrot.slane %v259_v35, 1  ;;  %v272_v61 = vrot.slane %v271_v50, 2  ;;  %v279_v62 = vrot.slane %v278_v51, 2 }
  0x63   : > { %v210_v44 = vadd.f32 %v209_v39, %v208_v31  ;;  %v216_v45 = vrot.slane %v215_v40, 1  ;;  %v224_v46 = vadd.f32 %v223_v41, %v222_v33  ;;  %v230_v47 = vrot.slane %v229_v42, 1 }
  0x64   : > { %v266_v49 = vadd.f32 %v265_v43, %v264_v36  ;;  %v261_v59 = vadd.f32 %v260_v48, %v259_v35  ;;  %v273_v9 = vadd.f32 %v272_v61, %v271_v50  ;;  %v280_v10 = vadd.f32 %v279_v62, %v278_v51 }
  0x65   : > { %v217_v52 = vadd.f32 %v216_v45, %v215_v40  ;;  %v233_v53 = vmul.f32 0.25, %v210_v44  ;;  %v231_v54 = vadd.f32 %v230_v47, %v229_v42  ;;  %v235_v55 = vmul.f32 0.25, %v224_v46 }
  0x66   : > { %v267_v56 = vrot.slane %v266_v49, 1  ;;  %v283_v6 = vmul.f32 0.25, %v261_v59  ;;  %v274_v18 = vrot.slane %v273_v9, 1  ;;  %v281_v19 = vrot.slane %v280_v10, 1 }
  0x67   : > { %v234_v57 = vmul.f32 0.25, %v217_v52  ;;  %v236_v58 = vmul.f32 0.25, %v231_v54 }
  0x68   : > { %v268_v60 = vadd.f32 %v267_v56, %v266_v49  ;;  %v275_v25 = vadd.f32 %v274_v18, %v273_v9  ;;  %v282_v26 = vadd.f32 %v281_v19, %v280_v10 }
  0x69   : > { %v241_v63 = vcombine.low %v233_v53, %v234_v57  ;;  %v242_v0 = vcombine.low %v235_v55, %v236_v58 }
  0x6a   : > { %v284_v7 = vmul.f32 0.25, %v268_v60  ;;  %v285_v33 = vmul.f32 0.25, %v275_v25  ;;  %v286_v34 = vmul.f32 0.25, %v282_v26 }
  0x6b   : > { %v245_v4 = vsub.f32 %v2753_v1, %v241_v63  ;;  %v246_v5 = vsub.f32 %v2755_v2, %v242_v0 }
  0x6c   : > { %v291_v17 = vcombine.low %v283_v6, %v284_v7  ;;  %v292_v37 = vcombine.low %v285_v33, %v286_v34 }
  0x6d   : > { %v300_v11 = vcombine.high %v245_v4, %v245_v4  ;;  %v2783_v12 = vand.u32 4294901760, %v245_v4  ;;  %v301_v13 = vcombine.high %v246_v5, %v246_v5  ;;  %v2789_v2 = vand.u32 4294901760, %v246_v5 }
  0x6e   : > { %v295_v24 = vsub.f32 %v2757_v3, %v291_v17  ;;  %v296_v42 = vsub.f32 %v2767_v8, %v292_v37 }
  0x6f   : > { %v304_v14 = vand.u32 4294901760, %v300_v11  ;;  %v377_v15 = vsub.f32 %v245_v4, %v2783_v12  ;;  %v2786_v16 = vand.u32 4294901760, %v301_v13  ;;  %v849_v29 = vsub.f32 %v246_v5, %v2789_v2 }
  0x70   : > { %v1254_v32 = vcombine.high %v295_v24, %v295_v24  ;;  %v2798_v39 = vand.u32 4294901760, %v295_v24  ;;  %v1255_v46 = vcombine.high %v296_v42, %v296_v42  ;;  %v2814_v50 = vand.u32 4294901760, %v296_v42 }
  0x71   : > { %305 = vmatprep.subr.mxu0 %v304_v14  ;;  %v371_v1 = vsub.f32 %v300_v11, %v304_v14  ;;  %v378_v20 = vand.u32 4294901760, %v377_v15  ;;  %461 = vmatprep.mubr.f32.mxu1 %v304_v14  ;;  %v843_v23 = vsub.f32 %v301_v13, %v2786_v16  ;;  %v850_v35 = vand.u32 4294901760, %v849_v29 }
  0x72   : > { %307 = vmatpush1.xpose.msra.mxu0 %v2783_v12  ;;  %v2794_v36 = vand.u32 4294901760, %v1254_v32  ;;  %v1331_v44 = vsub.f32 %v295_v24, %v2798_v39  ;;  %v2810_v48 = vand.u32 4294901760, %v1255_v46  ;;  %v1803_v54 = vsub.f32 %v296_v42, %v2814_v50 }
  0x73   : > { %v372_v21 = vand.u32 4294901760, %v371_v1  ;;  %v379_v22 = vsub.f32 %v377_v15, %v378_v20  ;;  %470 = vmatprep.subr.mxu0 %v371_v1  ;;  %v844_v31 = vand.u32 4294901760, %v843_v23  ;;  %v851_v38 = vsub.f32 %v849_v29, %v850_v35 }
  0x74   : > { %v1325_v41 = vsub.f32 %v1254_v32, %v2794_v36  ;;  %v1332_v8 = vand.u32 4294901760, %v1331_v44  ;;  %v1797_v52 = vsub.f32 %v1255_v46, %v2810_v48  ;;  %v1804_v56 = vand.u32 4294901760, %v1803_v54 }
  0x75   : > { %v373_v27 = vsub.f32 %v371_v1, %v372_v21  ;;  %v380_v28 = vand.u32 4294901760, %v379_v22  ;;  %v845_v3 = vsub.f32 %v843_v23, %v844_v31  ;;  %v852_v43 = vand.u32 4294901760, %v851_v38 }
  0x76   : > { %v1326_v45 = vand.u32 4294901760, %v1325_v41  ;;  %v1333_v49 = vsub.f32 %v1331_v44, %v1332_v8  ;;  %v1798_v55 = vand.u32 4294901760, %v1797_v52  ;;  %v1805_v58 = vsub.f32 %v1803_v54, %v1804_v56 }
  0x77   : > { %v374_v30 = vand.u32 4294901760, %v373_v27  ;;  %v846_v40 = vand.u32 4294901760, %v845_v3 }
  0x78   : > { %v1327_v47 = vsub.f32 %v1325_v41, %v1326_v45  ;;  %v1334_v53 = vand.u32 4294901760, %v1333_v49  ;;  %v1799_v57 = vsub.f32 %v1797_v52, %v1798_v55  ;;  %v1806_v60 = vand.u32 4294901760, %v1805_v58 }
  0x79   : > { %391 = vmatprep.subr.mxu1 %v374_v30  ;;  %375 = vmatprep.mubr.f32.mxu0 %v374_v30 }
  0x7a   : > { %397 = vmatpush1.xpose.msra.mxu1 %v380_v28  ;;  %381 = vmatmul.mubr.f32.vlgmr.msra.gmra.mrb[0].mxu0 %v380_v28  ;;  %v1328_v51 = vand.u32 4294901760, %v1327_v47  ;;  %v1800_v59 = vand.u32 4294901760, %v1799_v57 }
  0x7b   : > { %473 = vmatpush1.xpose.msra.mxu0 %v377_v15  ;;  %547 = vmatprep.subr.mxu1 %v304_v14 }
  0x7c   : > { %538 = vmatprep.mubr.f32.mxu0 %v371_v1  ;;  %627 = vmatprep.subr.mxu0 %v372_v21 }
  0x7d   : > { %463 = vmatmul.mubr.f32.vlgmr.msra.gmra.mrb[0].mxu1 %v2783_v12 }
  0x7e   : > { %549 = vmatpush1.xpose.msra.mxu1 %v2783_v12  ;;  %541 = vmatmul.mubr.f32.vlgmr.msra.gmra.mrb[2].mxu0 %v377_v15 }
  0x7f   : > { %615 = vmatprep.mubr.f32.mxu1 %v372_v21  ;;  %631 = vmatpush1.xpose.msra.mxu0 %v378_v20 }
  0x80   : > { %703 = vmatprep.subr.mxu1 %v304_v14  ;;  %695 = vmatprep.mubr.f32.mxu0 %v304_v14 }
  0x81   : > { %619 = vmatmul.mubr.f32.vlgmr.msra.gmra.mrb[2].mxu1 %v378_v20  ;;  %777 = vmatprep.subr.mxu0 %v2786_v16 }
  0x82   : > { %705 = vmatpush1.xpose.msra.mxu1 %v2783_v12  ;;  %697 = vmatmul.mubr.f32.vlgmr.msra.gmra.mrb[4].mxu0 %v2783_v12 }
  0x83   : > { %769 = vmatprep.mubr.f32.mxu1 %v304_v14  ;;  %779 = vmatpush1.xpose.msra.mxu0 %v2789_v2 }
  0x84   : > { %863 = vmatprep.subr.mxu1 %v846_v40  ;;  %847 = vmatprep.mubr.f32.mxu0 %v846_v40 }
  0x85   : > { %771 = vmatmul.mubr.f32.vlgmr.msra.gmra.mrb[4].mxu1 %v2783_v12  ;;  %942 = vmatprep.subr.mxu0 %v843_v23 }
  0x86   : > { %869 = vmatpush1.xpose.msra.mxu1 %v852_v43  ;;  %853 = vmatmul.mubr.f32.vlgmr.msra.gmra.mrb[6].mxu0 %v852_v43 }
  0x87   : > { %933 = vmatprep.mubr.f32.mxu1 %v2786_v16  ;;  %945 = vmatpush1.xpose.msra.mxu0 %v849_v29 }
  0x88   : > { %1019 = vmatprep.subr.mxu1 %v2786_v16  ;;  %1010 = vmatprep.mubr.f32.mxu0 %v843_v23 }
  0x89   : > { %935 = vmatmul.mubr.f32.vlgmr.msra.gmra.mrb[6].mxu1 %v2789_v2  ;;  %1099 = vmatprep.subr.mxu0 %v844_v31 }
  0x8a   : > { %1021 = vmatpush1.xpose.msra.mxu1 %v2789_v2  ;;  %1013 = vmatmul.mubr.f32.vlgmr.msra.gmra.mrb[8].mxu0 %v849_v29 }
  0x8b   : > { %1087 = vmatprep.mubr.f32.mxu1 %v844_v31  ;;  %1103 = vmatpush1.xpose.msra.mxu0 %v850_v35  ;;  %v297_v31 = vld [vmem:[#allocation2] sm:$0xf] }
  0x8c   : > { %1175 = vmatprep.subr.mxu1 %v2786_v16  ;;  %1167 = vmatprep.mubr.f32.mxu0 %v2786_v16 }
  0x8d   : > { %1091 = vmatmul.mubr.f32.vlgmr.msra.gmra.mrb[8].mxu1 %v850_v35  ;;  %1259 = vmatprep.subr.mxu0 %v2794_v36 }
  0x8e   : > { %1177 = vmatpush1.xpose.msra.mxu1 %v2789_v2  ;;  %1169 = vmatmul.mubr.f32.vlgmr.msra.gmra.mrb[10].mxu0 %v2789_v2 }
  0x8f   : > { %1241 = vmatprep.mubr.f32.mxu1 %v2786_v16  ;;  %1261 = vmatpush1.xpose.msra.mxu0 %v2798_v39 }
  0x90   : > { %1345 = vmatprep.subr.mxu1 %v1328_v51  ;;  %1329 = vmatprep.mubr.f32.mxu0 %v1328_v51 }
  0x91   : > { %1243 = vmatmul.mubr.f32.vlgmr.msra.gmra.mrb[10].mxu1 %v2789_v2  ;;  %1424 = vmatprep.subr.mxu0 %v1325_v41 }
  0x92   : > { %1351 = vmatpush1.xpose.msra.mxu1 %v1334_v53  ;;  %1335 = vmatmul.mubr.f32.vlgmr.msra.gmra.mrb[12].mxu0 %v1334_v53 }
  0x93   : > { %1415 = vmatprep.mubr.f32.mxu1 %v2794_v36  ;;  %1427 = vmatpush1.xpose.msra.mxu0 %v1331_v44 }
  0x94   : > { %1501 = vmatprep.subr.mxu1 %v2794_v36  ;;  %1492 = vmatprep.mubr.f32.mxu0 %v1325_v41 }
  0x95   : > { %1417 = vmatmul.mubr.f32.vlgmr.msra.gmra.mrb[12].mxu1 %v2798_v39  ;;  %1581 = vmatprep.subr.mxu0 %v1326_v45 }
  0x96   : > { %1503 = vmatpush1.xpose.msra.mxu1 %v2798_v39  ;;  %1495 = vmatmul.mubr.f32.vlgmr.msra.gmra.mrb[14].mxu0 %v1331_v44 }
  0x97   : > { %1569 = vmatprep.mubr.f32.mxu1 %v1326_v45  ;;  %1585 = vmatpush1.xpose.msra.mxu0 %v1332_v8 }
  0x98   : > { %1657 = vmatprep.subr.mxu1 %v2794_v36  ;;  %1649 = vmatprep.mubr.f32.mxu0 %v2794_v36 }
  0x99   : > { %1573 = vmatmul.mubr.f32.vlgmr.msra.gmra.mrb[14].mxu1 %v1332_v8  ;;  %1731 = vmatprep.subr.mxu0 %v2810_v48 }
  0x9a   : > { %1659 = vmatpush1.xpose.msra.mxu1 %v2798_v39  ;;  %1651 = vmatmul.mubr.f32.vlgmr.msra.gmra.mrb[16].mxu0 %v2798_v39 }
  0x9b   : > { %1723 = vmatprep.mubr.f32.mxu1 %v2794_v36  ;;  %1733 = vmatpush1.xpose.msra.mxu0 %v2814_v50 }
  0x9c   : > { %1817 = vmatprep.subr.mxu1 %v1800_v59  ;;  %1801 = vmatprep.mubr.f32.mxu0 %v1800_v59 }
  0x9d   : > { %1725 = vmatmul.mubr.f32.vlgmr.msra.gmra.mrb[16].mxu1 %v2798_v39  ;;  %1896 = vmatprep.subr.mxu0 %v1797_v52 }
  0x9e   : > { %1823 = vmatpush1.xpose.msra.mxu1 %v1806_v60  ;;  %1807 = vmatmul.mubr.f32.vlgmr.msra.gmra.mrb[18].mxu0 %v1806_v60 }
  0x9f   : > { %1887 = vmatprep.mubr.f32.mxu1 %v2810_v48  ;;  %1899 = vmatpush1.xpose.msra.mxu0 %v1803_v54 }
  0xa0   : > { %1973 = vmatprep.subr.mxu1 %v2810_v48  ;;  %1964 = vmatprep.mubr.f32.mxu0 %v1797_v52 }
  0xa1   : > { %1889 = vmatmul.mubr.f32.vlgmr.msra.gmra.mrb[18].mxu1 %v2814_v50  ;;  %2053 = vmatprep.subr.mxu0 %v1798_v55 }
  0xa2   : > { %1975 = vmatpush1.xpose.msra.mxu1 %v2814_v50  ;;  %1967 = vmatmul.mubr.f32.vlgmr.msra.gmra.mrb[20].mxu0 %v1803_v54 }
  0xa3   : > { %2041 = vmatprep.mubr.f32.mxu1 %v1798_v55  ;;  %2057 = vmatpush1.xpose.msra.mxu0 %v1804_v56 }
  0xa4   : > { %2129 = vmatprep.subr.mxu1 %v2810_v48  ;;  %2121 = vmatprep.mubr.f32.mxu0 %v2810_v48 }
  0xa5   : > { %2045 = vmatmul.mubr.f32.vlgmr.msra.gmra.mrb[20].mxu1 %v1804_v56 }
  0xa6   : > { %2131 = vmatpush1.xpose.msra.mxu1 %v2814_v50  ;;  %2123 = vmatmul.mubr.f32.vlgmr.msra.gmra.mrb[22].mxu0 %v2814_v50 }
  0xa7   : > { %2195 = vmatprep.mubr.f32.mxu1 %v2810_v48 }
  0xa9   : > { %2197 = vmatmul.mubr.f32.vlgmr.msra.gmra.mrb[22].mxu1 %v2814_v50 }
 0x14d   : > { %v382_v61 = vpop.f32.mrb[0].mxu0 }
 0x14e   : > { %v384_v62 = vpop.f32.mrb[1].mxu0 }
 0x150   : > { %v464_v63 = vpop.f32.mrb[0].mxu1 }
 0x151   : > { %v465_v0 = vadd.f32 %v464_v63, %v382_v61  ;;  %v466_v4 = vpop.f32.mrb[1].mxu1  ;;  %v542_v5 = vpop.f32.mrb[2].mxu0 }
 0x152   : > { %v544_v6 = vpop.f32.mrb[3].mxu0 }
 0x153   : > { %v543_v7 = vadd.f32 %v542_v5, %v465_v0  ;;  %v1251_v5 = vld [vmem:[#allocation3] sm:$0xf] }
 0x154   : > { %v620_v9 = vpop.f32.mrb[2].mxu1 }
 0x155   : > { %v621_v10 = vadd.f32 %v620_v9, %v543_v7  ;;  %v622_v11 = vpop.f32.mrb[3].mxu1  ;;  %v698_v12 = vpop.f32.mrb[4].mxu0 }
 0x156   : > { %v700_v13 = vpop.f32.mrb[5].mxu0  ;;  %v2210_v11 = vlaneseq (!%p2386_p8) }
 0x157   : > { %v699_v14 = vadd.f32 %v698_v12, %v621_v10 }
 0x158   : > { %v772_v15 = vpop.f32.mrb[4].mxu1  ;;  %v2211_v13 = vshrl.u32 (!%p2386_p8), %v2210_v11, 7 }
 0x159   : > { %v773_v16 = vadd.f32 %v772_v15, %v699_v14  ;;  %v774_v17 = vpop.f32.mrb[5].mxu1  ;;  %v854_v18 = vpop.f32.mrb[6].mxu0  ;;  %v2213_v14 = vand.u32 (!%p2386_p8), 127, %v2210_v11 }
 0x15a   : > { %v856_v19 = vpop.f32.mrb[7].mxu0 }
 0x15b   : > { %v855_v1 = vadd.f32 %v854_v18, %v773_v16  ;;  %vm2214_vm3 = vcmp.eq.s32.totalorder (!%p2386_p8), %v2211_v13, %v2213_v14 }
 0x15c   : > { %v936_v20 = vpop.f32.mrb[6].mxu1 }
 0x15d   : > { %v937_v2 = vadd.f32 %v936_v20, %v855_v1  ;;  %v938_v21 = vpop.f32.mrb[7].mxu1  ;;  %v1014_v22 = vpop.f32.mrb[8].mxu0 }
 0x15e   : > { %v1016_v23 = vpop.f32.mrb[9].mxu0 }
 0x15f   : > { %v1015_v24 = vadd.f32 %v1014_v22, %v937_v2 }
 0x160   : > { %v1092_v25 = vpop.f32.mrb[8].mxu1 }
 0x161   : > { %v1093_v26 = vadd.f32 %v1092_v25, %v1015_v24  ;;  %v1094_v27 = vpop.f32.mrb[9].mxu1  ;;  %v1170_v28 = vpop.f32.mrb[10].mxu0 }
 0x162   : > { %v1172_v29 = vpop.f32.mrb[11].mxu0 }
 0x163   : > { %v1171_v30 = vadd.f32 %v1170_v28, %v1093_v26 }
 0x164   : > { %v1244_v32 = vpop.f32.mrb[10].mxu1 }
 0x165   : > { %v1245_v33 = vadd.f32 %v1244_v32, %v1171_v30  ;;  %v1246_v34 = vpop.f32.mrb[11].mxu1  ;;  %v1336_v35 = vpop.f32.mrb[12].mxu0 }
 0x166   : > { %v1338_v3 = vpop.f32.mrb[13].mxu0 }
 0x167   : > { %v1248_v36 = vadd.f32 %v1245_v33, %v297_v31 }
 0x168   : > { %v1418_v37 = vpop.f32.mrb[12].mxu1 }
 0x169   : > { %1250 = vst.msk [vmem:[#allocation2] sm:$0xf] %vm1249_vm2, %v1248_v36  ;;  %v1419_v38 = vadd.f32 %v1418_v37, %v1336_v35  ;;  %v1420_v39 = vpop.f32.mrb[13].mxu1  ;;  %v1496_v40 = vpop.f32.mrb[14].mxu0 }
 0x16a   : > { %v1498_v41 = vpop.f32.mrb[15].mxu0 }
 0x16b   : > { %v1497_v42 = vadd.f32 %v1496_v40, %v1419_v38 }
 0x16c   : > { %v1574_v43 = vpop.f32.mrb[14].mxu1 }
 0x16d   : > { %v1575_v44 = vadd.f32 %v1574_v43, %v1497_v42  ;;  %v1576_v45 = vpop.f32.mrb[15].mxu1  ;;  %v1652_v46 = vpop.f32.mrb[16].mxu0 }
 0x16e   : > { %v1654_v8 = vpop.f32.mrb[17].mxu0 }
 0x16f   : > { %v1653_v47 = vadd.f32 %v1652_v46, %v1575_v44 }
 0x170   : > { %v1726_v48 = vpop.f32.mrb[16].mxu1  ;;  %v2851_v12 = vld [vmem:[#allocation2] sm:$0xf] (!%p2386_p8) }
 0x171   : > { %v1727_v49 = vadd.f32 %v1726_v48, %v1653_v47  ;;  %v1728_v50 = vpop.f32.mrb[17].mxu1  ;;  %v1808_v51 = vpop.f32.mrb[18].mxu0  ;;  %v2215_v16 = vsel (!%p2386_p8), %vm2214_vm3, %v2851_v12, 0.0 }
 0x172   : > { %v1810_v52 = vpop.f32.mrb[19].mxu0  ;;  %v2216_v18 = vsel (!%p2386_p8), %vm1249_vm2, %v2215_v16, 0.0 }
 0x173   : > { %v1809_v53 = vadd.f32 %v1808_v51, %v1727_v49  ;;  %2217 = vadd.xlane.f32.xlu0 (!%p2386_p8), %v2216_v18  ;;  %v2229_v1 = vrot.slane (!%p2386_p8), %v2216_v18, 4 }
 0x174   : > { %v1890_v54 = vpop.f32.mrb[18].mxu1 }
 0x175   : > { %v1891_v55 = vadd.f32 %v1890_v54, %v1809_v53  ;;  %v1892_v56 = vpop.f32.mrb[19].mxu1  ;;  %v1968_v57 = vpop.f32.mrb[20].mxu0  ;;  %v2230_v2 = vadd.f32 (!%p2386_p8), %v2229_v1, %v2216_v18 }
 0x176   : > { %v1970_v58 = vpop.f32.mrb[21].mxu0 }
 0x177   : > { %v1969_v59 = vadd.f32 %v1968_v57, %v1891_v55  ;;  %v2231_v22 = vrot.slane (!%p2386_p8), %v2230_v2, 2 }
 0x178   : > { %v2046_v60 = vpop.f32.mrb[20].mxu1 }
 0x179   : > { %v2047_v61 = vadd.f32 %v2046_v60, %v1969_v59  ;;  %v2048_v62 = vpop.f32.mrb[21].mxu1  ;;  %v2124_v63 = vpop.f32.mrb[22].mxu0  ;;  %v2232_v24 = vadd.f32 (!%p2386_p8), %v2231_v22, %v2230_v2 }
 0x17a   : > { %v2126_v0 = vpop.f32.mrb[23].mxu0 }
 0x17b   : > { %v2125_v4 = vadd.f32 %v2124_v63, %v2047_v61  ;;  %2207 = sbr.rel (%p2386_p8) target bundleno = 780 (0x30c), region = 44  ;;  %v2233_v26 = vrot.slane (!%p2386_p8), %v2232_v24, 1 }
 0x17c   : > { %v2198_v6 = vpop.f32.mrb[22].mxu1 }
 0x17d   : > { %v2199_v7 = vadd.f32 %v2198_v6, %v2125_v4  ;;  %v2200_v9 = vpop.f32.mrb[23].mxu1  ;;  %v2234_v28 = vadd.f32 (!%p2386_p8), %v2233_v26, %v2232_v24 }
 0x17f   : > { %v2202_v10 = vadd.f32 %v2199_v7, %v1251_v5  ;;  %2451 = vrsqrt.f32 (!%p2386_p8), %v2234_v28  ;;  %vm2237_vm4 = vcmp.eq.f32.partialorder (!%p2386_p8), %v2234_v28, inf  ;;  %v2240_v3 = vand.u32 (!%p2386_p8), 2147483648, %v2234_v28 }
 0x180   : > { %vm2239_vm6 = vcmp.eq.f32.partialorder (!%p2386_p8), %v2234_v28, 0.0 }
 0x181   : > { %2203 = vst.msk [vmem:[#allocation3] sm:$0xf] %vm1249_vm2, %v2202_v10 }
 0x188   : > { %v2853_v15 = vld [vmem:[#allocation3] sm:$0xf] }
 0x189   : > { %v2247_v17 = vsel %vm2214_vm3, %v2853_v15, 0.0  ;;  %v2452_v31 = vpop.eup %2451 }
 0x18a   : > { %v2248_v19 = vsel %vm1249_vm2, %v2247_v17, 0.0  ;;  %v2236_v34 = vmul.f32 %v2452_v31, %v2234_v28 }
 0x18b   : > { %2249 = vadd.xlane.f32.xlu0 %v2248_v19  ;;  %v2261_v20 = vrot.slane %v2248_v19, 4 }
 0x18c   : > { %v2238_v36 = vsel %vm2237_vm4, %v2234_v28, %v2236_v34 }
 0x18d   : > { %v2262_v21 = vadd.f32 %v2261_v20, %v2248_v19  ;;  %v2241_v42 = vsel %vm2239_vm6, %v2240_v3, %v2238_v36 }
 0x18e   : > { %v2242_v48 = vadd.f32 1e-06, %v2241_v42 }
 0x18f   : > { %v2263_v23 = vrot.slane %v2262_v21, 2 }
 0x191   : > { %v2264_v25 = vadd.f32 %v2263_v23, %v2262_v21 }
 0x193   : > { %v2265_v27 = vrot.slane %v2264_v25, 1 }
 0x195   : > { %v2266_v29 = vadd.f32 %v2265_v27, %v2264_v25 }
 0x197   : > { %2453 = vrsqrt.f32 %v2266_v29  ;;  %vm2269_vm5 = vcmp.eq.f32.partialorder %v2266_v29, inf  ;;  %v2272_v37 = vand.u32 2147483648, %v2266_v29  ;;  %vm2271_vm7 = vcmp.eq.f32.partialorder %v2266_v29, 0.0 }
 0x1a1   : > { %v2454_v32 = vpop.eup %2453 }
 0x1a2   : > { %v2268_v35 = vmul.f32 %v2454_v32, %v2266_v29 }
 0x1a4   : > { %v2270_v39 = vsel %vm2269_vm5, %v2266_v29, %v2268_v35 }
 0x1a5   : > { %v2273_v44 = vsel %vm2271_vm7, %v2272_v37, %v2270_v39 }
 0x1a6   : > { %v2274_v50 = vadd.f32 1e-06, %v2273_v44 }
 0x200   : > { %v2218_v30 = vpop.xlane.xlu0 %2217 }
 0x201   : > { %2455 = vrsqrt.f32 %v2218_v30  ;;  %vm2221_vm8 = vcmp.eq.f32.partialorder %v2218_v30, inf  ;;  %v2224_v41 = vand.u32 2147483648, %v2218_v30  ;;  %vm2223_vm9 = vcmp.eq.f32.partialorder %v2218_v30, 0.0 }
 0x20b   : > { %v2456_v38 = vpop.eup %2455 }
 0x20c   : > { %v2220_v40 = vmul.f32 %v2456_v38, %v2218_v30 }
 0x20e   : > { %v2222_v43 = vsel %vm2221_vm8, %v2218_v30, %v2220_v40 }
 0x20f   : > { %v2225_v46 = vsel %vm2223_vm9, %v2224_v41, %v2222_v43 }
 0x210   : > { %v2226_v8 = vadd.f32 1e-06, %v2225_v46 }
 0x218   : > { %v2250_v33 = vpop.xlane.xlu0 %2249 }
 0x219   : > { %2457 = vrsqrt.f32 %v2250_v33  ;;  %vm2253_vm10 = vcmp.eq.f32.partialorder %v2250_v33, inf  ;;  %v2256_v49 = vand.u32 2147483648, %v2250_v33  ;;  %vm2255_vm11 = vcmp.eq.f32.partialorder %v2250_v33, 0.0 }
 0x21a   : > { %2459 = vrcp.f32 %v2226_v8 }
 0x21b   : > { %2461 = vrcp.f32 %v2242_v48 }
 0x21c   : > { %2463 = vrcp.f32 %v2274_v50 }
 0x223   : > { %v2458_v45 = vpop.eup %2457 }
 0x224   : > { %v2252_v47 = vmul.f32 %v2458_v45, %v2250_v33  ;;  %v2460_v54 = vpop.eup %2459 }
 0x225   : > { %v2462_v55 = vpop.eup %2461  ;;  %v2245_v57 = vmul.f32 %v2460_v54, %v2851_v12 }
 0x226   : > { %v2254_v51 = vsel %vm2253_vm10, %v2250_v33, %v2252_v47  ;;  %v2464_v56 = vpop.eup %2463 }
 0x227   : > { %v2257_v52 = vsel %vm2255_vm11, %v2256_v49, %v2254_v51  ;;  %v2246_v60 = vmul.f32 %v2462_v55, %v2245_v57 }
 0x228   : > { %v2258_v53 = vadd.f32 1e-06, %v2257_v52 }
 0x22a   : > { %2465 = vrcp.f32 %v2258_v53 }
 0x234   : > { %v2466_v58 = vpop.eup %2465 }
 0x235   : > { %v2277_v59 = vmul.f32 %v2466_v58, %v2853_v15 }
 0x237   : > { %v2278_v61 = vmul.f32 %v2464_v56, %v2277_v59 }
 0x239   : > { %v2279_v62 = vmul.f32 %v2278_v61, %v2246_v60 }
 0x23b   : > { %v2280_v63 = vsel %vm1249_vm2, %v2279_v62, 0.0 }
 0x23c   : > { %2281 = vadd.xlane.f32.xlu1 %v2280_v63 }
 0x2c9   : > { %v2282_v0 = vpop.xlane.xlu1 %2281 }
 0x2ca   : > { %v2283_v4 = vrot.slane %v2282_v0, 4 }
 0x2cc   : > { %v2284_v5 = vadd.f32 %v2283_v4, %v2282_v0 }
 0x2ce   : > { %v2285_v6 = vrot.slane %v2284_v5, 2 }
 0x2d0   : > { %v2286_v7 = vadd.f32 %v2285_v6, %v2284_v5 }
 0x2d2   : > { %v2287_v9 = vrot.slane %v2286_v7, 1 }
 0x2d4   : > { %v2288_v10 = vadd.f32 %v2287_v9, %v2286_v7 }
 0x2d6   : > { %2393 = vpush %v2288_v10 }
 0x307   : > { %s2394_s18 = spop %2393 }
 0x308   : > { %s2290_s27 = smul.f32 9.536743e-07, %s2394_s18 }
 0x30a   : > { %v2291_v11 = vstv %s2290_s27 }
 0x30b   : > { %2292 = vst [vmem:[#allocation9] sm:$0x1] %v2291_v11 }
 0x30c PF: > { %p2411_p5 = scmp.eq.s32.totalorder %s2635_s13, 1  ;;  %s2600_s16 = smov [#allocation9]  }
 0x30d   : > { %s2300_s25 = sshll.u32 %s2600_s16, 4  ;;  %s2301_s25 = int_to_ptr.vmem [resolvable:$true] %s2300_s25 }
 0x30e   : > { %s2527_s29 = scalar_lea.vmem %s2301_s25, 16  ;;  %s2533_s30 = scalar_lea.vmem %s2301_s25, 32 }
 0x30f   : > { %p2528_p1 = scmp.ne.s32.totalorder %s2301_s25, %s2527_s29  ;;  %p2534_p0 = scmp.lt.s32.totalorder %s2301_s25, %s2301_s25 }
 0x310   : > { %p2535_p4 = scmp.lt.s32.totalorder %s2533_s30, %s2527_s29 }
 0x311   : > { %p2529_p2 = pnand %p2528_p1, %p2411_p5 }
 0x312   : > { %p2536_p9 = por %p2535_p4, %p2534_p0 }
 0x313   : > { %p2530_p3 = pneg %p2529_p2 }
 0x315   : > { %p2537_p10 = pnand %p2536_p9, %p2530_p3 }
 0x317   : > { %2540 = shalt.err (!%p2537_p10)
}
 0x318   : > { %s2541_s12 = scalar_lea.hbm %s2900_s2, 16 }
 0x319   : > { %p2542_p11 = scmp.ne.s32.totalorder %s2900_s2, %s2541_s12  ;;  %p2547_p12 = scmp.lt.u32.totalorder %s2541_s12, %s2900_s2 }
 0x31b   : > { %p2543_p13 = pnand %p2542_p11, %p2411_p5 }
 0x31d   : > { %p2544_p6 = pneg %p2543_p13 }
 0x31f   : > { %p2549_p7 = pnand %p2547_p12, %p2544_p6 }
 0x321   : > { %2552 = shalt.err (!%p2549_p7)
}
 0x322   : > { %2400 = dma.vmem_to_hbm [thread:$0]  (%p2411_p5), %s2301_s25, 16, %s2900_s2, [#allocation6]  }
 0x323   : > { %2578 = dma.done.wait (%p2411_p5), [#allocation6], 16  }
 0x324   : > { %2580 = vsyncadd (%p2411_p5), [#allocation6], 4294967280 }
 0x325 PF: > { %p16_p8 = scmp.ge.s32.totalorder %s2638_s14, 4   ;;  %s2909_s9 = smov %s2587_s10 }
 0x326   : > { %s2910_s10 = smov %s2591_s11  ;;  %s2911_s11 = smov %s2648_s17 }
 0x327   : > { %s2912_s12 = smov %s2638_s14  ;;  %18 = sbr.rel (!%p16_p8) target bundleno = 6 (0x6), region = 86 }
 0x32e   :  { %2313 = vsyncpa [#allocation5], 1 }
 0x32f   :  { %2315 = vsyncpa [#allocation5 + $0x1], 1 }
 0x330   :  { %2316 = vsyncpa [#allocation8], 1 }
 0x331   :  { %2318 = vsyncpa [#allocation8 + $0x1], 1 }
 0x332   :  { %2319 = vsyncpa [#allocation6], 1 }
 0x333   :  { %2321 = vsyncpa [#allocation6 + $0x1], 1 }

</bundles_post_ra>
